<compile_context>
chip_gen: v7x
topology: tpu7x:2x2x1
jax: 0.10.0
libtpu: 0.0.40
codegen_flags: <defaults>
</compile_context>

<pallas_src>
import jax
import jax.numpy as jnp
from jax.experimental import pallas as pl
from jax.experimental.pallas import tpu as pltpu


# ----------------------------- elementwise activations -----------------------------
# Concrete CustomizedActivation subclasses are not given in the spec; we provide a
# small library of common elementwise activations usable inside the kernel.

def _relu(x):
    return jnp.maximum(x, jnp.zeros((), x.dtype))


def _tanh(x):
    return jnp.tanh(x)


def _sigmoid(x):
    return jax.nn.sigmoid(x)


# ----------------------------- Pallas kernel -----------------------------

def _make_mixed_kernel(terms):
    """terms: static list of (k, fn) with k in (0, 1] — fused weighted sum on one tile."""
    def kernel(x_ref, o_ref):
        x = x_ref[...]
        acc = None
        for k, fn in terms:
            t = fn(x)
            if k != 1.0:
                t = t * jnp.asarray(k, dtype=t.dtype)
            acc = t if acc is None else acc + t
        o_ref[...] = acc.astype(o_ref.dtype)
    return kernel


def _mixed_call_2d(x2d, terms, block_rows):
    rows, width = x2d.shape
    grid = (pl.cdiv(rows, block_rows),)
    return pl.pallas_call(
        _make_mixed_kernel(terms),
        out_shape=jax.ShapeDtypeStruct((rows, width), x2d.dtype),
        grid_spec=pltpu.PrefetchScalarGridSpec(
            num_scalar_prefetch=0,
            grid=grid,
            in_specs=[pl.BlockSpec((block_rows, width), lambda i: (i, 0))],
            out_specs=pl.BlockSpec((block_rows, width), lambda i: (i, 0)),
        ),
        compiler_params=pltpu.CompilerParams(
            dimension_semantics=("parallel",)
        ),
    )(x2d)


# ----------------------------- wrapper -----------------------------

def mixed_activation(x: jnp.ndarray, activations=None, ks=None) -> jnp.ndarray:
    """Forward of MixedActivation: sum_i clamp(k_i,0,1) * activation_i(x).

    `activations` are elementwise jnp callables; `ks` are Python floats (as in the
    PyTorch module, where self.ks is a plain list). Default: (relu, tanh) with
    ks = [1.0, 0.0, ...] -> result == relu(x), matching the module's defaults.
    """
    if activations is None:
        activations = (_relu, _tanh)
    if ks is None:
        ks = [1.0] + [0.0] * (len(activations) - 1)

    # Resolve active terms at trace time (ks are compile-time constants).
    terms = []
    for k, fn in zip(ks, activations):
        k = max(min(float(k), 1.0), 0.0)
        if k != 0.0:
            terms.append((k, fn))
    if not terms:
        # PyTorch returns the scalar 0 here; return a zero array of x's shape/dtype.
        return jnp.zeros_like(x)

    orig_shape = x.shape
    dtype = x.dtype
    total = x.size
    itemsize = jnp.dtype(dtype).itemsize
    sub = {4: 8, 2: 16, 1: 32}.get(itemsize, 8)  # sublane packing per dtype

    # Pick the widest lane-dense last dim that divides the flat size -> no padding,
    # unmasked full-width stores, large DMA descriptors.
    width = None
    for cand in (2048, 1024, 512, 256, 128):
        if total % cand == 0:
            width = cand
            break

    flat = jnp.ravel(x)
    padded_total = total
    if width is None:
        # Rare ragged fallback (size not a multiple of 128): pad, then truncate after.
        width = 128
        chunk = sub * width
        padded_total = pl.cdiv(total, chunk) * chunk
        flat = jnp.concatenate(
            [flat, jnp.zeros((padded_total - total,), dtype=dtype)]
        )

    rows = padded_total // width

    # ~2 MiB per input block: double-buffered in+out is <= 8 MiB, within every
    # generation's scoped-VMEM default (v5e 16 MiB, v6e/v7x 32 MiB), and on the
    # flat part of the HBM roofline. Align block rows to the dtype's sublane packing.
    target_bytes = 2 * 1024 * 1024
    block_rows = max(sub, (target_bytes // (width * itemsize)) // sub * sub)
    if rows <= block_rows:
        # Single block covering the whole array (full-dim blocks satisfy tiling rules).
        block_rows = rows

    x2d = flat.reshape(rows, width)
    out2d = _mixed_call_2d(x2d, terms, block_rows)

    out_flat = out2d.reshape(-1)
    if padded_total != total:
        out_flat = out_flat[:total]
    return out_flat.reshape(orig_shape)


# TODO(synk): get_habitat / derivative / _intersection are training-time bookkeeping,
# not part of the forward pass, so they are not translated to Pallas.


if __name__ == "__main__":
    key = jax.random.PRNGKey(0)
    # NCHW input, small shape consistent with a conv-style activation input.
    x = jax.random.normal(key, (2, 4, 16, 16), dtype=jnp.float32)

    # Default MixedActivation: activations=(relu, tanh), ks=[1.0, 0.0] -> relu(x).
    y = mixed_activation(x)
    jax.block_until_ready(y)

    y_ref = jnp.maximum(x, 0.0)
    assert y.shape == x.shape and y.dtype == x.dtype
    assert jnp.allclose(y, y_ref), "mismatch vs reference MixedActivation (relu)"

    # Also exercise a genuinely mixed case: 0.5*relu + 0.5*tanh.
    y_mix = mixed_activation(x, activations=(_relu, _tanh), ks=[0.5, 0.5])
    jax.block_until_ready(y_mix)
    y_mix_ref = 0.5 * jnp.maximum(x, 0.0) + 0.5 * jnp.tanh(x)
    assert jnp.allclose(y_mix, y_mix_ref, atol=1e-6), "mismatch vs mixed reference"

    print("KERNEL_OK")
</pallas_src>

<mosaic_0001>
module attributes {stable_mosaic.version = 11 : i64} {
  func.func @kernel(%arg0: i32, %arg1: memref<1x2048xf32, #tpu.memory_space<vmem>>, %arg2: memref<1x2048xf32, #tpu.memory_space<vmem>>) attributes {dimension_semantics = [#tpu.dimension_semantics<parallel>], iteration_bounds = array<i64: 1>, scalar_prefetch = 0 : i64, scratch_operands = 0 : i64, tpu.core_type = #tpu.core_type<tc>, window_params = [{transform_indices = @transform_0, window_bounds = array<i64: 1, 2048>}, {transform_indices = @transform_1, window_bounds = array<i64: 1, 2048>}]} {
    %c0 = arith.constant 0 : index
    %c0_0 = arith.constant 0 : index
    %0 = vector.load %arg1[%c0, %c0_0] : memref<1x2048xf32, #tpu.memory_space<vmem>>, vector<1x2048xf32>
    %cst = arith.constant 0.000000e+00 : f32
    %1 = vector.broadcast %cst : f32 to vector<1x2048xf32>
    %2 = arith.maximumf %0, %1 : vector<1x2048xf32>
    %c0_1 = arith.constant 0 : index
    %c0_2 = arith.constant 0 : index
    %3 = vector.load %arg2[%c0_1, %c0_2] : memref<1x2048xf32, #tpu.memory_space<vmem>>, vector<1x2048xf32>
    tpu.vector_store %arg2[%c0_1, %c0_2], %2 {strides = array<i32>} : memref<1x2048xf32, #tpu.memory_space<vmem>>, vector<1x2048xf32>,
    return
  }
  func.func @transform_0(%arg0: i32) -> (i32, i32) {
    %c0_i32 = arith.constant 0 : i32
    %c0_i32_0 = arith.constant 0 : i32
    return %arg0, %c0_i32 : i32, i32
  }
  func.func @transform_1(%arg0: i32) -> (i32, i32) {
    %c0_i32 = arith.constant 0 : i32
    %c0_i32_0 = arith.constant 0 : i32
    return %arg0, %c0_i32 : i32, i32
  }
}

</mosaic_0001>

<bundles_post_ra>
// kernel: tpu_custom_call.1
= control target key start
LH: loop header
LB: loop body
LE: loop exit
PB: predicated region body
PF: predicated region fallthrough
CT: control target
= control target key end

     0   :  { %6 = vsyncpa [#allocation3], 0  ;;  %s128_s0 = inlined_call_operand.hbm [shape: f32[1,2048], index: 0, kind: input, shape index: {}]   ;;  %s129_s1 = inlined_call_operand.hbm [shape: f32[1,2048], index: 1, kind: output, shape index: {}]  }
   0x1   :  { %7 = vsyncpa [#allocation4], 0  ;;  %s92_s6 = smov [#allocation2]   ;;  %s44_s10 = scalar_lea.hbm %s128_s0, 256 }
   0x2   :  { %s14_s7 = sshll.u32 %s92_s6, 4  ;;  %p45_p0 = scmp.ne.s32.totalorder %s128_s0, %s44_s10  ;;  %s15_s7 = int_to_ptr.vmem [resolvable:$true] %s14_s7 }
   0x3   :  { %p48_p1 = scmp.lt.u32.totalorder %s44_s10, %s128_s0 }
   0x5   :  { %p50_p2 = pnand %p48_p1, %p45_p0 }
   0x7   :  { %53 = shalt.err (!%p50_p2)
}
   0x8   :  { %s54_s15 = scalar_lea.vmem %s15_s7, 256  ;;  %p59_p4 = scmp.lt.s32.totalorder %s15_s7, %s15_s7 }
   0x9   :  { %p55_p3 = scmp.ne.s32.totalorder %s15_s7, %s54_s15  ;;  %p60_p5 = scmp.lt.s32.totalorder %s54_s15, %s54_s15 }
   0xb   :  { %p61_p6 = por %p60_p5, %p59_p4 }
   0xd   :  { %p62_p7 = pnand %p61_p6, %p55_p3 }
   0xf   :  { %65 = shalt.err (!%p62_p7)
}
  0x10   :  { %17 = dma.hbm_to_vmem [thread:$0]  %s128_s0, 256, %s15_s7, [#allocation3]  }
  0x11   :  { %88 = dma.done.wait [#allocation3], 256  }
  0x12   :  { %89 = vsyncadd [#allocation3], 4294967040  ;;  %s93_s18 = smov [#allocation5]   ;;  %v21_v0 = vld [vmem:[#allocation2] sm:$0xff]  ;;  %v22_v1 = vld [vmem:[#allocation2 + $0x8] sm:$0xff] }
  0x13   :  { %s33_s19 = sshll.u32 %s93_s18, 4  ;;  %v23_v2 = vmax.f32 %v21_v0, 0.0  ;;  %v24_v3 = vmax.f32 %v22_v1, 0.0  ;;  %s34_s19 = int_to_ptr.vmem [resolvable:$true] %s33_s19 }
  0x14   :  { %s66_s20 = scalar_lea.vmem %s34_s19, 256  ;;  %p71_p9 = scmp.lt.s32.totalorder %s34_s19, %s34_s19 }
  0x15   :  { %25 = vst [vmem:[#allocation5] sm:$0xff] %v23_v2  ;;  %26 = vst [vmem:[#allocation5 + $0x8] sm:$0xff] %v24_v3  ;;  %p67_p8 = scmp.ne.s32.totalorder %s34_s19, %s66_s20  ;;  %p72_p10 = scmp.lt.s32.totalorder %s66_s20, %s66_s20 }
  0x17   :  { %p73_p11 = por %p72_p10, %p71_p9 }
  0x19   :  { %p74_p12 = pnand %p73_p11, %p67_p8 }
  0x1b   :  { %77 = shalt.err (!%p74_p12)
}
  0x1c   :  { %s78_s22 = scalar_lea.hbm %s129_s1, 256 }
  0x1d   :  { %p79_p13 = scmp.ne.s32.totalorder %s129_s1, %s78_s22  ;;  %p82_p0 = scmp.lt.u32.totalorder %s78_s22, %s129_s1 }
  0x1f   :  { %p84_p1 = pnand %p82_p0, %p79_p13 }
  0x21   :  { %87 = shalt.err (!%p84_p1)
}
  0x22   :  { %36 = dma.vmem_to_hbm [thread:$0]  %s34_s19, 256, %s129_s1, [#allocation4]  }
  0x23   :  { %90 = dma.done.wait [#allocation4], 256  }
  0x24   :  { %91 = vsyncadd [#allocation4], 4294967040 }
  0x25   :  { %40 = vsyncpa [#allocation3], 1 }
  0x26   :  { %41 = vsyncpa [#allocation4], 1 }

</bundles_post_ra>
